<compile_context>
chip_gen: v6e
topology: v6e:2x2x1
jax: 0.10.0
libtpu: 0.0.40
codegen_flags: <defaults>
</compile_context>

<pallas_src>
import functools

import jax
import jax.numpy as jnp
from jax.experimental import pallas as pl
from jax.experimental.pallas import tpu as pltpu


def _round_up(x, m):
    return (x + m - 1) // m * m


def _ce_kernel(logits_ref, labels_ref, out_ref, sum_ref, cnt_ref, *,
               num_classes, total_rows, rows_per_block, reduction,
               ignore_index):
    i = pl.program_id(0)

    @pl.when(i == 0)
    def _():
        sum_ref[...] = jnp.zeros_like(sum_ref)
        cnt_ref[...] = jnp.zeros_like(cnt_ref)

    x = logits_ref[...].astype(jnp.float32)             # (TN, C)
    lab = labels_ref[...]                               # (TN, 1) int32
    tn, c = x.shape

    cls = jax.lax.broadcasted_iota(jnp.int32, (tn, c), 1)

    # Row-wise log-sum-exp (numerically stable).
    row_max = jnp.max(x, axis=-1, keepdims=True)                       # (TN,1)
    lse = jnp.log(jnp.sum(jnp.exp(x - row_max), axis=-1, keepdims=True)) + row_max

    # Gather logit at the label index via one-hot compare (no dynamic gather).
    picked = jnp.sum(jnp.where(cls == lab, x, 0.0), axis=-1, keepdims=True)

    valid = jnp.logical_and(lab != ignore_index,
                            jnp.logical_and(lab >= 0, lab < num_classes))
    if total_rows % rows_per_block != 0:
        # Last block extends past the array; mask out-of-range rows.
        row_ids = i * rows_per_block + jax.lax.broadcasted_iota(
            jnp.int32, (tn, 1), 0)
        valid = jnp.logical_and(valid, row_ids < total_rows)

    per_row = jnp.where(valid, lse - picked, 0.0)                       # (TN,1)

    sum_ref[...] += jnp.sum(per_row, axis=0, keepdims=True)
    cnt_ref[...] += jnp.sum(valid.astype(jnp.float32), axis=0, keepdims=True)

    @pl.when(i == pl.num_programs(0) - 1)
    def _():
        if reduction == 'mean':
            out_ref[...] = sum_ref[...] / cnt_ref[...]
        else:
            # 'sum' (and anything else) falls back to the raw sum.
            # TODO(synk): reduction='none' returns per-element losses
            # (non-scalar output) and is not implemented in this kernel.
            out_ref[...] = sum_ref[...]


def _ce_pallas(logits2d, labels1d, num_classes, reduction, ignore_index):
    N, C = logits2d.shape

    # Row tile: biggest block whose (lane-padded) f32 VMEM footprint stays
    # around <= 4 MiB so the double-buffered pipeline fits scoped VMEM on
    # every TPU generation while keeping blocks large (near HBM roofline).
    lane_padded_row_bytes = _round_up(C, 128) * 4
    tn_cap = max(8, min(1024, (4 * 1024 * 1024) // lane_padded_row_bytes))
    tn_cap = max(8, (tn_cap // 8) * 8)
    TN = min(_round_up(N, 8), tn_cap)          # always a multiple of 8
    G = pl.cdiv(N, TN)

    labels2d = labels1d.astype(jnp.int32).reshape(N, 1)

    kernel = functools.partial(
        _ce_kernel, num_classes=num_classes, total_rows=N,
        rows_per_block=TN, reduction=reduction, ignore_index=ignore_index)

    out = pl.pallas_call(
        kernel,
        out_shape=jax.ShapeDtypeStruct((1, 1), jnp.float32),
        grid=(G,),
        in_specs=[
            pl.BlockSpec((TN, C), lambda i: (i, 0)),   # last dim = full C
            pl.BlockSpec((TN, 1), lambda i: (i, 0)),
        ],
        out_specs=pl.BlockSpec((1, 1), lambda i: (0, 0)),
        scratch_shapes=[
            pltpu.VMEM((1, 1), jnp.float32),   # running loss sum
            pltpu.VMEM((1, 1), jnp.float32),   # running valid count
        ],
        compiler_params=pltpu.CompilerParams(
            dimension_semantics=("arbitrary",),      # scalar reduction axis
            vmem_limit_bytes=32 * 1024 * 1024),
    )(logits2d, labels2d)
    return out[0, 0]


def adaptive_cross_entropy(logits, labels, attention_mask=None, *,
                           task_type='ner', num_classes=None,
                           reduction='mean', ignore_index=-100):
    """Pallas equivalent of AdaptiveCrossEntropy.forward."""
    if num_classes is None:
        num_classes = logits.shape[-1]

    if task_type == 'ner':
        logits2d = logits.reshape(-1, num_classes)
        labels1d = labels.reshape(-1).astype(jnp.int32)
        if attention_mask is not None:
            am = attention_mask.reshape(-1)
            labels1d = jnp.where(am == 1, labels1d, jnp.int32(ignore_index))
    elif task_type in ('text_cls', 'text_cls_f1', 're'):
        logits2d = logits.reshape(-1, num_classes)
        labels1d = labels.reshape(-1).astype(jnp.int32)
    else:
        raise ValueError('[AdaptiveCrossEntropy]: unknown task_type')

    return _ce_pallas(logits2d, labels1d, num_classes, reduction, ignore_index)


if __name__ == "__main__":
    key = jax.random.PRNGKey(0)
    k1, k2, k3, k4, k5 = jax.random.split(key, 5)

    # ---- NER path: logits [B, S, C], labels [B, S], attention_mask [B, S] ----
    B, S, C = 2, 8, 9
    logits = jax.random.normal(k1, (B, S, C), dtype=jnp.float32)
    labels = jax.random.randint(k2, (B, S), 0, C, dtype=jnp.int32)
    attention_mask = (jax.random.uniform(k3, (B, S)) > 0.3).astype(jnp.int32)
    attention_mask = attention_mask.at[0, 0].set(1)   # ensure >=1 active token

    loss_ner = adaptive_cross_entropy(logits, labels, attention_mask,
                                      task_type='ner', num_classes=C,
                                      reduction='mean')
    loss_ner = jax.block_until_ready(loss_ner)

    # Plain-JAX reference (CrossEntropyLoss with ignore_index=-100, mean).
    lf = logits.reshape(-1, C)
    lb = labels.reshape(-1)
    am = attention_mask.reshape(-1)
    lb_m = jnp.where(am == 1, lb, -100)
    valid = lb_m >= 0
    logp = jax.nn.log_softmax(lf, axis=-1)
    picked = jnp.take_along_axis(logp, jnp.clip(lb_m, 0, C - 1)[:, None],
                                 axis=1)[:, 0]
    ref_ner = jnp.where(valid, -picked, 0.0).sum() / valid.sum()
    assert jnp.allclose(loss_ner, ref_ner, atol=1e-5, rtol=1e-5), "NER mismatch"

    # ---- text_cls path: logits [B, C], labels [B] ----
    B2, C2 = 8, 16
    logits2 = jax.random.normal(k4, (B2, C2), dtype=jnp.float32)
    labels2 = jax.random.randint(k5, (B2,), 0, C2, dtype=jnp.int32)

    loss_cls = adaptive_cross_entropy(logits2, labels2, None,
                                      task_type='text_cls', num_classes=C2,
                                      reduction='mean')
    loss_cls = jax.block_until_ready(loss_cls)

    logp2 = jax.nn.log_softmax(logits2, axis=-1)
    ref_cls = -jnp.take_along_axis(logp2, labels2[:, None], axis=1)[:, 0].mean()
    assert jnp.allclose(loss_cls, ref_cls, atol=1e-5, rtol=1e-5), "text_cls mismatch"

    print("KERNEL_OK")
</pallas_src>

<mosaic_0001>
module attributes {stable_mosaic.version = 11 : i64} {
  func.func @_ce_kernel(%arg0: i32, %arg1: memref<16x9xf32, #tpu.memory_space<vmem>>, %arg2: memref<16x1xi32, #tpu.memory_space<vmem>>, %arg3: memref<1x1xf32, #tpu.memory_space<vmem>>, %arg4: memref<1x1xf32, #tpu.memory_space<vmem>>, %arg5: memref<1x1xf32, #tpu.memory_space<vmem>>) attributes {dimension_semantics = [#tpu.dimension_semantics<arbitrary>], iteration_bounds = array<i64: 1>, scalar_prefetch = 0 : i64, scratch_operands = 2 : i64, tpu.core_type = #tpu.core_type<tc>, window_params = [{transform_indices = @transform_0, window_bounds = array<i64: 16, 9>}, {transform_indices = @transform_1, window_bounds = array<i64: 16, 1>}, {pipeline_mode = #tpu.pipeline_mode<synchronous>, transform_indices = @transform_2, window_bounds = array<i64: 1, 1>}]} {
    %c0_i32 = arith.constant 0 : i32
    %0 = arith.cmpi eq, %arg0, %c0_i32 : i32
    %1 = arith.extui %0 : i1 to i32
    %c0_i32_0 = arith.constant 0 : i32
    %2 = arith.cmpi ne, %1, %c0_i32_0 : i32
    scf.if %2 {
      %cst_21 = arith.constant 0.000000e+00 : f32
      %47 = vector.broadcast %cst_21 : f32 to vector<1x1xf32>
      %c0_22 = arith.constant 0 : index
      %c0_23 = arith.constant 0 : index
      %48 = vector.load %arg4[%c0_22, %c0_23] : memref<1x1xf32, #tpu.memory_space<vmem>>, vector<1x1xf32>
      tpu.vector_store %arg4[%c0_22, %c0_23], %47 {strides = array<i32>} : memref<1x1xf32, #tpu.memory_space<vmem>>, vector<1x1xf32>,
      %cst_24 = arith.constant 0.000000e+00 : f32
      %49 = vector.broadcast %cst_24 : f32 to vector<1x1xf32>
      %c0_25 = arith.constant 0 : index
      %c0_26 = arith.constant 0 : index
      %50 = vector.load %arg5[%c0_25, %c0_26] : memref<1x1xf32, #tpu.memory_space<vmem>>, vector<1x1xf32>
      tpu.vector_store %arg5[%c0_25, %c0_26], %49 {strides = array<i32>} : memref<1x1xf32, #tpu.memory_space<vmem>>, vector<1x1xf32>,
    } else {
    }
    %c0 = arith.constant 0 : index
    %c0_1 = arith.constant 0 : index
    %3 = vector.load %arg1[%c0, %c0_1] : memref<16x9xf32, #tpu.memory_space<vmem>>, vector<16x9xf32>
    %c0_2 = arith.constant 0 : index
    %c0_3 = arith.constant 0 : index
    %4 = vector.load %arg2[%c0_2, %c0_3] : memref<16x1xi32, #tpu.memory_space<vmem>>, vector<16x1xi32>
    %5 = tpu.iota {dimensions = array<i32: 1>} : vector<16x9xi32>
    %cst = arith.constant dense<0xFF800000> : vector<16xf32>
    %6 = vector.multi_reduction <maximumf>, %3, %cst [1] : vector<16x9xf32> to vector<16xf32>
    %7 = vector.shape_cast %6 : vector<16xf32> to vector<16x1xf32>
    %8 = vector.broadcast %7 : vector<16x1xf32> to vector<16x9xf32>
    %9 = arith.subf %3, %8 : vector<16x9xf32>
    %10 = math.exp %9 : vector<16x9xf32>
    %cst_4 = arith.constant dense<0.000000e+00> : vector<16xf32>
    %11 = vector.multi_reduction <add>, %10, %cst_4 [1] : vector<16x9xf32> to vector<16xf32>
    %12 = vector.shape_cast %11 : vector<16xf32> to vector<16x1xf32>
    %13 = math.log %12 : vector<16x1xf32>
    %14 = arith.addf %13, %7 : vector<16x1xf32>
    %15 = vector.broadcast %4 : vector<16x1xi32> to vector<16x9xi32>
    %16 = arith.cmpi eq, %5, %15 : vector<16x9xi32>
    %cst_5 = arith.constant 0.000000e+00 : f32
    %17 = vector.broadcast %cst_5 : f32 to vector<16x9xf32>
    %18 = arith.select %16, %3, %17 : vector<16x9xi1>, vector<16x9xf32>
    %cst_6 = arith.constant dense<0.000000e+00> : vector<16xf32>
    %19 = vector.multi_reduction <add>, %18, %cst_6 [1] : vector<16x9xf32> to vector<16xf32>
    %20 = vector.shape_cast %19 : vector<16xf32> to vector<16x1xf32>
    %c-100_i32 = arith.constant -100 : i32
    %21 = vector.broadcast %c-100_i32 : i32 to vector<16x1xi32>
    %22 = arith.cmpi ne, %4, %21 : vector<16x1xi32>
    %c0_i32_7 = arith.constant 0 : i32
    %23 = vector.broadcast %c0_i32_7 : i32 to vector<16x1xi32>
    %24 = arith.cmpi sge, %4, %23 : vector<16x1xi32>
    %c9_i32 = arith.constant 9 : i32
    %25 = vector.broadcast %c9_i32 : i32 to vector<16x1xi32>
    %26 = arith.cmpi slt, %4, %25 : vector<16x1xi32>
    %27 = arith.andi %24, %26 : vector<16x1xi1>
    %28 = arith.andi %22, %27 : vector<16x1xi1>
    %29 = arith.subf %14, %20 : vector<16x1xf32>
    %cst_8 = arith.constant 0.000000e+00 : f32
    %30 = vector.broadcast %cst_8 : f32 to vector<16x1xf32>
    %31 = arith.select %28, %29, %30 : vector<16x1xi1>, vector<16x1xf32>
    %c0_9 = arith.constant 0 : index
    %c0_10 = arith.constant 0 : index
    %32 = vector.load %arg4[%c0_9, %c0_10] : memref<1x1xf32, #tpu.memory_space<vmem>>, vector<1x1xf32>
    %cst_11 = arith.constant dense<0.000000e+00> : vector<1xf32>
    %33 = vector.multi_reduction <add>, %31, %cst_11 [0] : vector<16x1xf32> to vector<1xf32>
    %34 = vector.shape_cast %33 : vector<1xf32> to vector<1x1xf32>
    %35 = arith.addf %32, %34 : vector<1x1xf32>
    %c0_12 = arith.constant 0 : index
    %c0_13 = arith.constant 0 : index
    %36 = vector.load %arg4[%c0_12, %c0_13] : memref<1x1xf32, #tpu.memory_space<vmem>>, vector<1x1xf32>
    tpu.vector_store %arg4[%c0_12, %c0_13], %35 {strides = array<i32>} : memref<1x1xf32, #tpu.memory_space<vmem>>, vector<1x1xf32>,
    %c0_14 = arith.constant 0 : index
    %c0_15 = arith.constant 0 : index
    %37 = vector.load %arg5[%c0_14, %c0_15] : memref<1x1xf32, #tpu.memory_space<vmem>>, vector<1x1xf32>
    %38 = arith.extui %28 : vector<16x1xi1> to vector<16x1xi32>
    %39 = arith.sitofp %38 : vector<16x1xi32> to vector<16x1xf32>
    %cst_16 = arith.constant dense<0.000000e+00> : vector<1xf32>
    %40 = vector.multi_reduction <add>, %39, %cst_16 [0] : vector<16x1xf32> to vector<1xf32>
    %41 = vector.shape_cast %40 : vector<1xf32> to vector<1x1xf32>
    %42 = arith.addf %37, %41 : vector<1x1xf32>
    %c0_17 = arith.constant 0 : index
    %c0_18 = arith.constant 0 : index
    %43 = vector.load %arg5[%c0_17, %c0_18] : memref<1x1xf32, #tpu.memory_space<vmem>>, vector<1x1xf32>
    tpu.vector_store %arg5[%c0_17, %c0_18], %42 {strides = array<i32>} : memref<1x1xf32, #tpu.memory_space<vmem>>, vector<1x1xf32>,
    %c0_i32_19 = arith.constant 0 : i32
    %44 = arith.cmpi eq, %arg0, %c0_i32_19 : i32
    %45 = arith.extui %44 : i1 to i32
    %c0_i32_20 = arith.constant 0 : i32
    %46 = arith.cmpi ne, %45, %c0_i32_20 : i32
    scf.if %46 {
      %c0_21 = arith.constant 0 : index
      %c0_22 = arith.constant 0 : index
      %47 = vector.load %arg4[%c0_21, %c0_22] : memref<1x1xf32, #tpu.memory_space<vmem>>, vector<1x1xf32>
      %c0_23 = arith.constant 0 : index
      %c0_24 = arith.constant 0 : index
      %48 = vector.load %arg5[%c0_23, %c0_24] : memref<1x1xf32, #tpu.memory_space<vmem>>, vector<1x1xf32>
      %49 = arith.divf %47, %48 : vector<1x1xf32>
      %c0_25 = arith.constant 0 : index
      %c0_26 = arith.constant 0 : index
      %50 = vector.load %arg3[%c0_25, %c0_26] : memref<1x1xf32, #tpu.memory_space<vmem>>, vector<1x1xf32>
      tpu.vector_store %arg3[%c0_25, %c0_26], %49 {strides = array<i32>} : memref<1x1xf32, #tpu.memory_space<vmem>>, vector<1x1xf32>,
    } else {
    }
    return
  }
  func.func @transform_0(%arg0: i32) -> (i32, i32) {
    %c0_i32 = arith.constant 0 : i32
    %c0_i32_0 = arith.constant 0 : i32
    return %arg0, %c0_i32 : i32, i32
  }
  func.func @transform_1(%arg0: i32) -> (i32, i32) {
    %c0_i32 = arith.constant 0 : i32
    %c0_i32_0 = arith.constant 0 : i32
    return %arg0, %c0_i32 : i32, i32
  }
  func.func @transform_2(%arg0: i32) -> (i32, i32) {
    %c0_i32 = arith.constant 0 : i32
    %c0_i32_0 = arith.constant 0 : i32
    %c0_i32_1 = arith.constant 0 : i32
    return %c0_i32, %c0_i32_0 : i32, i32
  }
}

</mosaic_0001>

<bundles_post_ra>
// kernel: tpu_custom_call.1
= control target key start
LH: loop header
LB: loop body
LE: loop exit
PB: predicated region body
PF: predicated region fallthrough
CT: control target
= control target key end

     0   :  { %vm25_vm0 = vcmask 72704   ;;  %v171_v4 = vmov 0   ;;  %s239_s0 = inlined_call_operand.vmem [shape: f32[16,9], index: 0, kind: input, shape index: {}]   ;;  %s240_s1 = inlined_call_operand.vmem [shape: s32[16,1], index: 1, kind: input, shape index: {}]   ;;  %s241_s2 = inlined_call_operand.hbm [shape: f32[1,1], index: 2, kind: output, shape index: {}]  }
   0x1   :  { %v19_v0 = vld [vmem:[%s239_s0] sm:$0xff]  ;;  %v20_v1 = vld [vmem:[%s239_s0 + $0x8] sm:$0xff]  ;;  %137 = vset.pattern.permute.xlu1 %v171_v4  ;;  %138 = vset.pattern.permute.xlu0 %v171_v4 }
   0x2   :  { %v21_v2 = vld [vmem:[%s240_s1] sm:$0xff]  ;;  %v26_v3 = vsel %vm25_vm0, %v19_v0, -inf }
   0x3   :  { %7 = vsyncpa [#allocation5], 0  ;;  %27 = vmax.xlane.f32.xlu0 %v26_v3  ;;  %51 = vperm.xlu1 %137, %v21_v2   ;;  %v29_v5 = vsel %vm25_vm0, %v20_v1, -inf  ;;  %v22_v6 = vld [vmem:[%s240_s1 + $0x8] sm:$0xff]  ;;  %v23_v13 = vlaneseq  ;;  %vm68_vm3 = vcmp.ge.s32.totalorder %v21_v2, 0  ;;  %vm70_vm4 = vcmp.lt.s32.totalorder %v21_v2, 9 }
   0x4   :  { %vm69_vm5 = vcmp.ge.s32.totalorder %v22_v6, 0  ;;  %vm71_vm6 = vcmp.lt.s32.totalorder %v22_v6, 9  ;;  %vm66_vm7 = vcmp.ne.s32.totalorder %v21_v2, 4294967196  ;;  %vm72_vm8 = vmand %vm68_vm3, %vm70_vm4  ;;  %vm67_vm9 = vcmp.ne.s32.totalorder %v22_v6, 4294967196  ;;  %s173_s0 = smov [#allocation4]  }
   0x5   :  { %v24_v15 = vand.u32 127, %v23_v13  ;;  %vm210_vm10 = vmand %vm66_vm7, %vm72_vm8  ;;  %vm81_vm11 = vcmask 7168   ;;  %v172_v26 = vmov 0.0   ;;  %vm16_vm14 = vcmask 0   ;;  %s124_s1 = sshll.u32 %s173_s0, 4  ;;  %s125_s1 = int_to_ptr.vmem [resolvable:$true] %s124_s1 }
   0x6   :  { %v132_v27 = vsel %vm210_vm10, 1.0, %v172_v26  ;;  %vm73_vm12 = vmand %vm69_vm5, %vm71_vm6  ;;  %17 = vst.msk [vmem:[#allocation2] sm:$0x1] %vm16_vm14, %v172_v26  ;;  %s149_s17 = scalar_lea.vmem %s125_s1, 16  ;;  %s153_s18 = scalar_lea.vmem %s125_s1, 32 }
   0x7   :  { %30 = vmax.xlane.f32.xlu0 %v29_v5  ;;  %54 = vperm.xlu1 %137, %v22_v6   ;;  %v99_v28 = vsel %vm81_vm11, %v132_v27, 0.0  ;;  %vm217_vm13 = vmand %vm67_vm9, %vm73_vm12  ;;  %18 = vst.msk [vmem:[#allocation3] sm:$0x1] %vm16_vm14, %v172_v26  ;;  %p150_p0 = scmp.ne.s32.totalorder %s125_s1, %s149_s17  ;;  %p154_p1 = scmp.lt.s32.totalorder %s125_s1, %s125_s1 }
   0x8   :  { %v133_v30 = vsel %vm217_vm13, 1.0, %v172_v26  ;;  %p155_p2 = scmp.lt.s32.totalorder %s153_s18, %s149_s17 }
   0x9   :  { %v100_v31 = vsel %vm81_vm11, %v133_v30, 0.0 }
   0xa   :  { %v101_v32 = vadd.f32 %v100_v31, %v99_v28  ;;  %p156_p3 = por %p155_p2, %p154_p1 }
   0xc   :  { %v102_v33 = vrot.slane %v101_v32, 4  ;;  %p157_p4 = pnand %p156_p3, %p150_p0 }
   0xe   :  { %v103_v34 = vadd.f32 %v102_v33, %v101_v32  ;;  %v94_v38 = vld [vmem:[#allocation3] sm:$0x1] }
  0x10   :  { %v104_v35 = vrot.slane %v103_v34, 2 }
  0x12   :  { %v105_v36 = vadd.f32 %v104_v35, %v103_v34 }
  0x14   :  { %v106_v37 = vrot.slane %v105_v36, 1 }
  0x16   :  { %v107_v39 = vadd.f32 %v106_v37, %v105_v36 }
  0x18   :  { %v108_v40 = vadd.f32 %v107_v39, %v94_v38 }
  0x1a   :  { %109 = vst.msk [vmem:[#allocation3] sm:$0x1] %vm16_vm14, %v108_v40 }
  0x21   :  { %v114_v60 = vld [vmem:[#allocation3] sm:$0x1] }
  0x7e   :  { %v52_v14 = vpop.permute.xlu1 %51 }
  0x7f   :  { %vm56_vm1 = vcmp.eq.s32.totalorder %v24_v15, %v52_v14 }
  0x80   :  { %v58_v18 = vsel %vm56_vm1, %v19_v0, 0.0 }
  0x81   :  { %v60_v20 = vsel %vm25_vm0, %v58_v18, 0.0 }
  0x82   :  { %v55_v16 = vpop.permute.xlu1 %54 }
  0x83   :  { %vm57_vm2 = vcmp.eq.s32.totalorder %v24_v15, %v55_v16 }
  0x84   :  { %v59_v22 = vsel %vm57_vm2, %v20_v1, 0.0 }
  0x85   :  { %v63_v24 = vsel %vm25_vm0, %v59_v22, 0.0 }
  0x8c   :  { %v28_v7 = vpop.xlane.xlu0 %27 }
  0x8d   :  { %v32_v8 = vsub.f32 %v19_v0, %v28_v7  ;;  %v80_v0 = vld [vmem:[#allocation2] sm:$0x1] }
  0x8f   :  { %v34_v9 = vmul.f32 1.442695, %v32_v8 }
  0x90   :  { %v203_v10 = vpop.xlane.xlu0 %30 }
  0x91   :  { %139 = vpow2.f32 %v34_v9  ;;  %v33_v11 = vsub.f32 %v20_v1, %v203_v10 }
  0x93   :  { %v36_v12 = vmul.f32 1.442695, %v33_v11 }
  0x95   :  { %141 = vpow2.f32 %v36_v12 }
  0x9e   :  { %v140_v17 = vpop.eup %139 }
  0x9f   :  { %v38_v19 = vsel %vm25_vm0, %v140_v17, 0.0 }
  0xa0   :  { %39 = vadd.xlane.f32.xlu0 %v38_v19 }
  0xa2   :  { %v142_v21 = vpop.eup %141 }
  0xa3   :  { %v41_v23 = vsel %vm25_vm0, %v142_v21, 0.0 }
  0xa4   :  { %42 = vadd.xlane.f32.xlu1 %v41_v23  ;;  %61 = vadd.xlane.f32.xlu0 %v60_v20 }
  0xa8   :  { %64 = vadd.xlane.f32.xlu0 %v63_v24 }
 0x129   :  { %v40_v41 = vpop.xlane.xlu0 %39 }
 0x12a   :  { %143 = vlog2.f32 %v40_v41 }
 0x12d   :  { %v43_v42 = vpop.xlane.xlu1 %42  ;;  %v62_v45 = vpop.xlane.xlu0 %61 }
 0x12e   :  { %145 = vlog2.f32 %v43_v42 }
 0x12f   :  { %147 = vrcp.f32 %v114_v60 }
 0x131   :  { %v65_v51 = vpop.xlane.xlu0 %64 }
 0x137   :  { %v144_v43 = vpop.eup %143 }
 0x138   :  { %v45_v44 = vmul.f32 0.6931472, %v144_v43 }
 0x13a   :  { %v48_v46 = vadd.f32 %v45_v44, %v28_v7 }
 0x13b   :  { %v146_v47 = vpop.eup %145 }
 0x13c   :  { %v47_v48 = vmul.f32 0.6931472, %v146_v47  ;;  %v76_v49 = vsub.f32 %v48_v46, %v62_v45  ;;  %v148_v3 = vpop.eup %147 }
 0x13e   :  { %v49_v50 = vadd.f32 %v47_v48, %v203_v10  ;;  %v78_v52 = vsel %vm210_vm10, %v76_v49, 0.0 }
 0x13f   :  { %v82_v55 = vsel %vm81_vm11, %v78_v52, 0.0 }
 0x140   :  { %v77_v53 = vsub.f32 %v49_v50, %v65_v51 }
 0x142   :  { %v79_v54 = vsel %vm217_vm13, %v77_v53, 0.0 }
 0x143   :  { %v83_v56 = vsel %vm81_vm11, %v79_v54, 0.0 }
 0x144   :  { %v84_v57 = vadd.f32 %v83_v56, %v82_v55 }
 0x146   :  { %v85_v58 = vrot.slane %v84_v57, 4 }
 0x148   :  { %v86_v59 = vadd.f32 %v85_v58, %v84_v57 }
 0x14a   :  { %v87_v61 = vrot.slane %v86_v59, 2 }
 0x14c   :  { %v88_v62 = vadd.f32 %v87_v61, %v86_v59 }
 0x14e   :  { %v89_v63 = vrot.slane %v88_v62, 1 }
 0x150   :  { %v90_v1 = vadd.f32 %v89_v63, %v88_v62 }
 0x152   :  { %v91_v2 = vadd.f32 %v90_v1, %v80_v0 }
 0x154   :  { %93 = vst.msk [vmem:[#allocation2] sm:$0x1] %vm16_vm14, %v91_v2 }
 0x15b   :  { %v113_v4 = vld [vmem:[#allocation2] sm:$0x1] }
 0x15c   :  { %v116_v5 = vmul.f32 %v148_v3, %v113_v4 }
 0x15e   :  { %117 = vst.msk [vmem:[#allocation4] sm:$0x1] %vm16_vm14, %v116_v5 }
 0x15f   :  { %160 = shalt.err (!%p157_p4)
}
 0x160   :  { %127 = dma.vmem_to_hbm [thread:$0]  %s125_s1, 16, %s241_s2, [#allocation5]  }
 0x161   :  { %169 = dma.done.wait [#allocation5], 16  }
 0x162   :  { %170 = vsyncadd [#allocation5], 4294967280 }
 0x163   :  { %131 = vsyncpa [#allocation5], 1 }

</bundles_post_ra>
